<compile_context>
chip_gen: v6e
topology: v6e:2x2x1
jax: 0.10.0
libtpu: 0.0.40
codegen_flags: <defaults>
</compile_context>

<pallas_src>
import functools

import jax
import jax.numpy as jnp
from jax.experimental import pallas as pl
from jax.experimental.pallas import tpu as pltpu


def _rowpool_kernel(x_ref, o_ref, *, k):
    # x_ref: (tm, toh, k, tw) -- the k row-phases of each pooling window, one DMA block.
    # o_ref: (tm, toh, tw)    -- per-window row maximum (stays in the input dtype).
    acc = x_ref[:, :, 0, :]
    for i in range(1, k):
        acc = jnp.maximum(acc, x_ref[:, :, i, :])
    o_ref[...] = acc


def _pick_tiles(m, oh, w, itemsize, k, total_vmem_budget):
    """Pick (tm, toh, tw) so the double-buffered in+out footprint stays under budget."""
    pad_k = ((k + 7) // 8) * 8                       # sublane padding of the k axis in VMEM
    unit = max(1, total_vmem_budget // (2 * (pad_k + 1)))   # budget per (tm*toh*tw) elements

    # Lane tile: full W unless a single row group blows the budget (then 128-multiples).
    if w * itemsize > unit:
        tw = max(128, (unit // (itemsize * 128)) * 128)
    else:
        tw = w
    row_bytes = tw * itemsize

    if oh * row_bytes <= unit:
        toh = oh
        tm = max(1, min(m, unit // max(1, oh * row_bytes)))   # fold batch*channels per block
    else:
        tm = 1
        toh = max(1, min(oh, unit // row_bytes))

    # v7x megacore: make sure the parallel grid has >= 2 steps when possible.
    if pl.cdiv(m, tm) * pl.cdiv(oh, toh) * pl.cdiv(w, tw) < 2:
        if tm >= 2:
            tm = pl.cdiv(tm, 2)
        elif toh >= 2:
            toh = pl.cdiv(toh, 2)
    return tm, toh, tw


@functools.partial(jax.jit, static_argnames=("pooling", "padding", "stride", "dilation"))
def maxpool2d_pallas(x, pooling=2, padding=0, stride=2, dilation=1):
    """Pallas TPU forward of nn.MaxPool2d(pooling, stride, padding, dilation), NCHW input."""
    assert padding == 0 and dilation == 1, "only padding=0, dilation=1 supported"
    # TODO(synk): pooling != stride (overlapping windows) would need halo'd row blocks.
    assert pooling == stride, "only non-overlapping pooling (kernel_size == stride) supported"
    k = int(pooling)

    n, c, h, w = x.shape
    assert h >= k and w >= k, "spatial dims must be at least the pooling size"
    oh, ow = h // k, w // k
    m = n * c
    itemsize = x.dtype.itemsize

    xm = x.reshape(m, h, w)                      # free: merges leading dims
    if h != oh * k:                              # odd H: drop unused trailing rows (edge case copy)
        xm = xm[:, : oh * k, :]
    xv = xm.reshape(m, oh, k, w)                 # free: row-major split of H into (OH, k)

    tm, toh, tw = _pick_tiles(m, oh, w, itemsize, k, total_vmem_budget=24 * 1024 * 1024)
    grid = (pl.cdiv(m, tm), pl.cdiv(oh, toh), pl.cdiv(w, tw))

    in_specs = [
        pl.BlockSpec((tm, toh, k, tw), lambda mi, ri, wi: (mi, ri, 0, wi)),
    ]
    out_specs = pl.BlockSpec((tm, toh, tw), lambda mi, ri, wi: (mi, ri, wi))

    # Row-pooled intermediate: y[m, oh, w] = max_i x[m, oh*k + i, w]  (half the input size).
    y = pl.pallas_call(
        functools.partial(_rowpool_kernel, k=k),
        out_shape=jax.ShapeDtypeStruct((m, oh, w), x.dtype),
        grid=grid,
        in_specs=in_specs,
        out_specs=out_specs,
        compiler_params=pltpu.CompilerParams(
            dimension_semantics=("parallel", "parallel", "parallel"),
            vmem_limit_bytes=32 * 1024 * 1024,
        ),
    )(xv)

    # Width pair-reduction: fused XLA element-wise epilogue on the half-sized intermediate.
    out = y[:, :, 0 : (ow - 1) * k + 1 : k]
    for j in range(1, k):
        out = jnp.maximum(out, y[:, :, j : j + (ow - 1) * k + 1 : k])

    return out.reshape(n, c, oh, ow)             # free: splits leading dim back to (N, C)


def _maxpool2d_ref(x, pooling=2, stride=2):
    """Pure-JAX reference (reduce_window) for correctness checking."""
    if jnp.issubdtype(x.dtype, jnp.floating):
        init = jnp.array(-jnp.inf, dtype=x.dtype)
    else:
        init = jnp.array(jnp.iinfo(x.dtype).min, dtype=x.dtype)
    return jax.lax.reduce_window(
        x, init, jax.lax.max,
        window_dimensions=(1, 1, pooling, pooling),
        window_strides=(1, 1, stride, stride),
        padding="VALID",
    )


if __name__ == "__main__":
    key = jax.random.PRNGKey(0)
    x = jax.random.normal(key, (2, 4, 16, 16), dtype=jnp.float32)

    out = jax.block_until_ready(
        maxpool2d_pallas(x, pooling=2, padding=0, stride=2, dilation=1))
    assert out.shape == (2, 4, 8, 8), out.shape
    assert jnp.array_equal(out, _maxpool2d_ref(x)), "mismatch vs reference max pool (f32)"

    # bf16 path: stays bf16 inside the kernel (exact match expected, max only).
    xb = x.astype(jnp.bfloat16)
    outb = jax.block_until_ready(maxpool2d_pallas(xb))
    assert jnp.array_equal(outb, _maxpool2d_ref(xb)), "mismatch vs reference max pool (bf16)"

    # Odd spatial size (trailing row/col correctly ignored).
    x2 = jax.random.normal(jax.random.PRNGKey(0), (2, 4, 15, 15), dtype=jnp.float32)
    out2 = jax.block_until_ready(maxpool2d_pallas(x2))
    assert out2.shape == (2, 4, 7, 7), out2.shape
    assert jnp.array_equal(out2, _maxpool2d_ref(x2)), "mismatch vs reference max pool (odd H/W)"

    print("KERNEL_OK")
</pallas_src>

<mosaic_0001>
module attributes {stable_mosaic.version = 11 : i64} {
  func.func @_rowpool_kernel(%arg0: i32, %arg1: i32, %arg2: i32, %arg3: memref<4x8x2x16xf32, #tpu.memory_space<vmem>>, %arg4: memref<4x8x16xf32, #tpu.memory_space<vmem>>) attributes {dimension_semantics = [#tpu.dimension_semantics<parallel>, #tpu.dimension_semantics<parallel>, #tpu.dimension_semantics<parallel>], iteration_bounds = array<i64: 2, 1, 1>, scalar_prefetch = 0 : i64, scratch_operands = 0 : i64, tpu.core_type = #tpu.core_type<tc>, window_params = [{transform_indices = @transform_0, window_bounds = array<i64: 4, 8, 2, 16>}, {transform_indices = @transform_1, window_bounds = array<i64: 4, 8, 16>}]} {
    %c0 = arith.constant 0 : index
    %c0_0 = arith.constant 0 : index
    %c0_1 = arith.constant 0 : index
    %c0_2 = arith.constant 0 : index
    %0 = vector.load %arg3[%c0, %c0_0, %c0_1, %c0_2] : memref<4x8x2x16xf32, #tpu.memory_space<vmem>>, vector<4x8x1x16xf32>
    %1 = vector.shape_cast %0 : vector<4x8x1x16xf32> to vector<4x8x16xf32>
    %c0_3 = arith.constant 0 : index
    %c0_4 = arith.constant 0 : index
    %c1 = arith.constant 1 : index
    %c0_5 = arith.constant 0 : index
    %2 = vector.load %arg3[%c0_3, %c0_4, %c1, %c0_5] : memref<4x8x2x16xf32, #tpu.memory_space<vmem>>, vector<4x8x1x16xf32>
    %3 = vector.shape_cast %2 : vector<4x8x1x16xf32> to vector<4x8x16xf32>
    %4 = arith.maximumf %1, %3 : vector<4x8x16xf32>
    %c0_6 = arith.constant 0 : index
    %c0_7 = arith.constant 0 : index
    %c0_8 = arith.constant 0 : index
    %5 = vector.load %arg4[%c0_6, %c0_7, %c0_8] : memref<4x8x16xf32, #tpu.memory_space<vmem>>, vector<4x8x16xf32>
    tpu.vector_store %arg4[%c0_6, %c0_7, %c0_8], %4 {strides = array<i32>} : memref<4x8x16xf32, #tpu.memory_space<vmem>>, vector<4x8x16xf32>,
    return
  }
  func.func @transform_0(%arg0: i32, %arg1: i32, %arg2: i32) -> (i32, i32, i32, i32) {
    %c0_i32 = arith.constant 0 : i32
    %c0_i32_0 = arith.constant 0 : i32
    return %arg0, %arg1, %c0_i32, %arg2 : i32, i32, i32, i32
  }
  func.func @transform_1(%arg0: i32, %arg1: i32, %arg2: i32) -> (i32, i32, i32) {
    %c0_i32 = arith.constant 0 : i32
    return %arg0, %arg1, %arg2 : i32, i32, i32
  }
}

</mosaic_0001>

<bundles_post_ra>
// kernel: maxpool2d_pallas.1
= control target key start
LH: loop header
LB: loop body
LE: loop exit
PB: predicated region body
PF: predicated region fallthrough
CT: control target
= control target key end

     0   :  { %6 = vsyncpa [#allocation3], 0  ;;  %s856_s0 = inlined_call_operand.hbm [shape: f32[8,8,2,16], index: 0, kind: input, shape index: {}]   ;;  %s857_s1 = inlined_call_operand.vmem [shape: f32[8,8,16], index: 1, kind: output, shape index: {}]  }
   0x1   :  { %8 = vsyncpa [#allocation3 + $0x1], 0  ;;  %s652_s6 = smov 0   ;;  %s654_s7 = smov 0  }
   0x2   :  { %s656_s8 = smov 0   ;;  %s658_s9 = smov 0  }
   0x3   :  { %s660_s10 = smov 0   ;;  %s662_s11 = smov 0  }
   0x4 LB: > { %s486_s12 = sadd.s32 4294967295, %s637_s11   ;;  %s33_s13 = sadd.s32 1, %s633_s10  ;;  %s637_s11 = sphi %s662_s11, %s14_s11   ;;  %s633_s10 = sphi %s660_s10, %s865_s10   ;;  %s629_s9 = sphi %s658_s9, %s864_s9   ;;  %s625_s8 = sphi %s656_s8, %s863_s8   ;;  %s621_s7 = sphi %s654_s7, %s862_s7   ;;  %s617_s6 = sphi %s652_s6, %s861_s6  }
   0x5   : > { %p35_p0 = scmp.ge.s32.totalorder %s33_s13, 2  ;;  %s44_s14 = sadd.s32 1, %s625_s8 }
   0x6   : > { %p51_p1 = scmp.ne.s32.totalorder %s625_s8, %s621_s7  ;;  %p52_p2 = scmp.eq.s32.totalorder %s637_s11, 0 }
   0x7   : > { %s867_s13 = smov (%p35_p0, %s33_s13), 0  ;;  %p57_p4 = scmp.ne.s32.totalorder %s621_s7, %s617_s6 }
   0x8   : > { %p688_p3 = por %p52_p2, %p51_p1  ;;  %s37_s16 = ssub.s32 %s633_s10, %s867_s13 }
   0x9   : > { %p58_p5 = scmp.eq.s32.totalorder %s486_s12, 0  ;;  %p42_p6 = scmp.eq.s32.totalorder %s37_s16, 0 }
   0xa   : > { %p508_p8 = scmp.lt.s32.totalorder %s637_s11, 2  ;;  %s111_s19 = sand.u32 1, %s625_s8  }
   0xb   : > { %p695_p7 = por %p58_p5, %p57_p4  ;;  %s501_s20 = sshll.u32 %s633_s10, 10 }
   0xc   : > { %s701_s18 = scalar_select %p42_p6, %s625_s8, %s44_s14  }
   0xd   : > { %s490_s21 = sshll.u32 %s111_s19, 6  ;;  %s125_s24 = scalar_lea.hbm %s856_s0, %s501_s20 }
   0xe   : > { %s115_s25 = scalar_lea.vmem [#allocation2], %s490_s21  ;;  %p710_p9 = pnand %p508_p8, %p688_p3 }
   0xf   : > { %s126_s26 = sshll.u32 %s115_s25, 4  ;;  %s112_s28 = scalar_lea.sflag [#allocation3], %s111_s19  ;;  %s127_s26 = int_to_ptr.vmem [resolvable:$true] %s126_s26 }
  0x10   : > { %p561_p10 = pneg %p710_p9  ;;  %s572_s29 = scalar_lea.vmem %s127_s26, 1024 }
  0x11   : > { %p573_p11 = scmp.ne.s32.totalorder %s127_s26, %s572_s29  ;;  %s639_s30 = smov [#allocation2]  }
  0x12   : > { %s577_s2 = sshll.u32 %s639_s30, 4  ;;  %s578_s2 = int_to_ptr.vmem [resolvable:$false] %s577_s2 }
  0x13   : > { %p575_p12 = pnand %p573_p11, %p561_p10  ;;  %s579_s3 = scalar_lea.vmem %s578_s2, 2048 }
  0x14   : > { %p580_p0 = scmp.lt.s32.totalorder %s127_s26, %s578_s2  ;;  %p581_p1 = scmp.lt.s32.totalorder %s579_s3, %s572_s29 }
  0x15   : > { %p576_p13 = pneg %p575_p12 }
  0x16   : > { %p582_p2 = por %p581_p1, %p580_p0 }
  0x18   : > { %p583_p3 = pnand %p582_p2, %p576_p13 }
  0x1a   : > { %586 = shalt.err (!%p583_p3)
}
  0x1b   : > { %s640_s4 = smov 32   ;;  %s641_s5 = smov 2  }
  0x1c   : > { %507 = dma.hbm_to_vmem [thread:$0]  (!%p710_p9), %s125_s24, 1024, %s127_s26, %s112_s28, %s640_s4, %s640_s4, %s641_s5  }
  0x1d   : > { %p494_p4 = scmp.ge.s32.totalorder %s637_s11, 1  ;;  %p134_p5 = scmp.lt.s32.totalorder %s637_s11, 3 }
  0x1f   : > { %p135_p6 = pnand %p494_p4, %p134_p5 }
  0x20   : > { %s140_s6 = sand.u32 (!%p135_p6), 1, %s621_s7  }
  0x21   : > { %138 = sbr.rel (%p135_p6) target bundleno = 78 (0x4e), region = 24  ;;  %s495_s12 = sshll.u32 (!%p135_p6), %s140_s6, 6 }
  0x22   : > { %s141_s14 = scalar_lea.sflag (!%p135_p6), [#allocation3], %s140_s6  ;;  %s721_s15 = scalar_lea.vmem (!%p135_p6), [#allocation2], %s495_s12 }
  0x26   : > { %612 = dma.done.wait (%p695_p7), %s141_s14, 1024  }
  0x27   : > { %614 = vsyncadd (%p695_p7), %s141_s14, 4294966272  ;;  %s496_s16 = sshll.u32 %s629_s9, 2  ;;  %vm312_vm0 = vcmask 1041409   ;;  %vm315_vm1 = vcmask 1042434   ;;  %vm318_vm2 = vcmask 1043459   ;;  %vm321_vm3 = vcmask 1044484  }
  0x28   : > { %p172_p8 = scmp.lt.s32.totalorder %s496_s16, 7  ;;  %v183_v0 = vld [vmem:[%s721_s15] sm:$0x1]  ;;  %v184_v1 = vld [vmem:[%s721_s15 + $0x2] sm:$0x1]  ;;  %vm324_vm4 = vcmask 1045509  }
  0x29   : > { %v185_v2 = vld [vmem:[%s721_s15 + $0x4] sm:$0x1]  ;;  %v186_v3 = vld [vmem:[%s721_s15 + $0x6] sm:$0x1]  ;;  %v187_v4 = vld [vmem:[%s721_s15 + $0x8] sm:$0x1] }
  0x2a   : > { %s869_s16 = smov (!%p172_p8, %s496_s16), 7  ;;  %v188_v5 = vld [vmem:[%s721_s15 + $0xa] sm:$0x1]  ;;  %v189_v6 = vld [vmem:[%s721_s15 + $0xc] sm:$0x1]  ;;  %vm327_vm5 = vcmask 1046534  }
  0x2b   : > { %v190_v7 = vld [vmem:[%s721_s15 + $0xe] sm:$0x1]  ;;  %v215_v8 = vld [vmem:[%s721_s15 + $0x1] sm:$0x1]  ;;  %v216_v9 = vld [vmem:[%s721_s15 + $0x3] sm:$0x1] }
  0x2c   : > { %v217_v10 = vld [vmem:[%s721_s15 + $0x5] sm:$0x1]  ;;  %v218_v11 = vld [vmem:[%s721_s15 + $0x7] sm:$0x1]  ;;  %vm330_vm6 = vcmask 1047559   ;;  %v247_v15 = vmax.f32 %v183_v0, %v215_v8  ;;  %v248_v16 = vmax.f32 %v184_v1, %v216_v9  ;;  %vm378_vm7 = vcmask 130048  }
  0x2d   : > { %v219_v12 = vld [vmem:[%s721_s15 + $0x9] sm:$0x1]  ;;  %v220_v13 = vld [vmem:[%s721_s15 + $0xb] sm:$0x1]  ;;  %v221_v14 = vld [vmem:[%s721_s15 + $0xd] sm:$0x1]  ;;  %v249_v17 = vmax.f32 %v185_v2, %v217_v10  ;;  %v250_v18 = vmax.f32 %v186_v3, %v218_v11 }
  0x2e   : > { %v222_v19 = vld [vmem:[%s721_s15 + $0xf] sm:$0x1]  ;;  %v251_v20 = vmax.f32 %v187_v4, %v219_v12  ;;  %v252_v21 = vmax.f32 %v188_v5, %v220_v13  ;;  %v253_v22 = vmax.f32 %v189_v6, %v221_v14  ;;  %v191_v23 = vld [vmem:[%s721_s15 + $0x10] sm:$0x1]  ;;  %s497_s9 = sshll.u32 %s869_s16, 3  ;;  %v311_v25 = vrot.slane %v248_v16, 7 }
  0x2f   : > { %v254_v24 = vmax.f32 %v190_v7, %v222_v19  ;;  %v314_v26 = vrot.slane %v249_v17, 6  ;;  %v317_v27 = vrot.slane %v250_v18, 5  ;;  %v192_v28 = vld [vmem:[%s721_s15 + $0x12] sm:$0x1]  ;;  %v193_v31 = vld [vmem:[%s721_s15 + $0x14] sm:$0x1]  ;;  %s771_s20 = scalar_lea.vmem %s857_s1, %s497_s9 }
  0x30   : > { %v320_v29 = vrot.slane %v251_v20, 4  ;;  %v323_v30 = vrot.slane %v252_v21, 3  ;;  %v194_v32 = vld [vmem:[%s721_s15 + $0x16] sm:$0x1]  ;;  %v313_v33 = vsel %vm312_vm0, %v311_v25, %v247_v15  ;;  %v326_v34 = vrot.slane %v253_v22, 2 }
  0x31   : > { %v329_v35 = vrot.slane %v254_v24, 1  ;;  %v195_v36 = vld [vmem:[%s721_s15 + $0x18] sm:$0x1]  ;;  %v196_v37 = vld [vmem:[%s721_s15 + $0x1a] sm:$0x1]  ;;  %v316_v38 = vsel %vm315_vm1, %v314_v26, %v313_v33 }
  0x32   : > { %v197_v39 = vld [vmem:[%s721_s15 + $0x1c] sm:$0x1]  ;;  %v198_v40 = vld [vmem:[%s721_s15 + $0x1e] sm:$0x1]  ;;  %v223_v41 = vld [vmem:[%s721_s15 + $0x11] sm:$0x1]  ;;  %v319_v42 = vsel %vm318_vm2, %v317_v27, %v316_v38 }
  0x33   : > { %v224_v43 = vld [vmem:[%s721_s15 + $0x13] sm:$0x1]  ;;  %v225_v44 = vld [vmem:[%s721_s15 + $0x15] sm:$0x1]  ;;  %v226_v45 = vld [vmem:[%s721_s15 + $0x17] sm:$0x1]  ;;  %v255_v46 = vmax.f32 %v191_v23, %v223_v41  ;;  %v322_v47 = vsel %vm321_vm3, %v320_v29, %v319_v42 }
  0x34   : > { %v227_v48 = vld [vmem:[%s721_s15 + $0x19] sm:$0x1]  ;;  %v228_v49 = vld [vmem:[%s721_s15 + $0x1b] sm:$0x1]  ;;  %v229_v50 = vld [vmem:[%s721_s15 + $0x1d] sm:$0x1]  ;;  %v256_v51 = vmax.f32 %v192_v28, %v224_v43  ;;  %v257_v52 = vmax.f32 %v193_v31, %v225_v44  ;;  %v258_v53 = vmax.f32 %v194_v32, %v226_v45  ;;  %v325_v54 = vsel %vm324_vm4, %v323_v30, %v322_v47 }
  0x35   : > { %v230_v55 = vld [vmem:[%s721_s15 + $0x1f] sm:$0x1]  ;;  %v259_v56 = vmax.f32 %v195_v36, %v227_v48  ;;  %v260_v57 = vmax.f32 %v196_v37, %v228_v49  ;;  %v261_v58 = vmax.f32 %v197_v39, %v229_v50  ;;  %v199_v59 = vld [vmem:[%s721_s15 + $0x20] sm:$0x1]  ;;  %v200_v60 = vld [vmem:[%s721_s15 + $0x22] sm:$0x1]  ;;  %v328_v61 = vsel %vm327_vm5, %v326_v34, %v325_v54 }
  0x36   : > { %v262_v62 = vmax.f32 %v198_v40, %v230_v55  ;;  %v332_v63 = vrot.slane %v256_v51, 7  ;;  %v334_v0 = vrot.slane %v257_v52, 6  ;;  %v201_v1 = vld [vmem:[%s721_s15 + $0x24] sm:$0x1]  ;;  %v202_v2 = vld [vmem:[%s721_s15 + $0x26] sm:$0x1]  ;;  %v331_v3 = vsel %vm330_vm6, %v329_v35, %v328_v61 }
  0x37   : > { %v336_v4 = vrot.slane %v258_v53, 5  ;;  %v338_v5 = vrot.slane %v259_v56, 4  ;;  %v340_v6 = vrot.slane %v260_v57, 3  ;;  %v203_v7 = vld [vmem:[%s721_s15 + $0x28] sm:$0x1]  ;;  %379 = vst.msk [vmem:[%s771_s20] sm:$0xff] %vm378_vm7, %v331_v3 }
  0x38   : > { %v333_v8 = vsel %vm312_vm0, %v332_v63, %v255_v46  ;;  %v342_v9 = vrot.slane %v261_v58, 2  ;;  %v344_v10 = vrot.slane %v262_v62, 1  ;;  %v204_v11 = vld [vmem:[%s721_s15 + $0x2a] sm:$0x1]  ;;  %v205_v12 = vld [vmem:[%s721_s15 + $0x2c] sm:$0x1] }
  0x39   : > { %v335_v13 = vsel %vm315_vm1, %v334_v0, %v333_v8  ;;  %v206_v14 = vld [vmem:[%s721_s15 + $0x2e] sm:$0x1]  ;;  %v231_v15 = vld [vmem:[%s721_s15 + $0x21] sm:$0x1]  ;;  %v232_v16 = vld [vmem:[%s721_s15 + $0x23] sm:$0x1] }
  0x3a   : > { %v337_v17 = vsel %vm318_vm2, %v336_v4, %v335_v13  ;;  %v233_v18 = vld [vmem:[%s721_s15 + $0x25] sm:$0x1]  ;;  %v234_v19 = vld [vmem:[%s721_s15 + $0x27] sm:$0x1]  ;;  %v235_v20 = vld [vmem:[%s721_s15 + $0x29] sm:$0x1]  ;;  %v263_v21 = vmax.f32 %v199_v59, %v231_v15  ;;  %v264_v22 = vmax.f32 %v200_v60, %v232_v16 }
  0x3b   : > { %v339_v23 = vsel %vm321_vm3, %v338_v5, %v337_v17  ;;  %v236_v24 = vld [vmem:[%s721_s15 + $0x2b] sm:$0x1]  ;;  %v237_v25 = vld [vmem:[%s721_s15 + $0x2d] sm:$0x1]  ;;  %v238_v26 = vld [vmem:[%s721_s15 + $0x2f] sm:$0x1]  ;;  %v265_v27 = vmax.f32 %v201_v1, %v233_v18  ;;  %v266_v28 = vmax.f32 %v202_v2, %v234_v19  ;;  %v267_v29 = vmax.f32 %v203_v7, %v235_v20 }
  0x3c   : > { %v341_v30 = vsel %vm324_vm4, %v340_v6, %v339_v23  ;;  %v268_v31 = vmax.f32 %v204_v11, %v236_v24  ;;  %v269_v32 = vmax.f32 %v205_v12, %v237_v25  ;;  %v270_v33 = vmax.f32 %v206_v14, %v238_v26  ;;  %v207_v34 = vld [vmem:[%s721_s15 + $0x30] sm:$0x1]  ;;  %v208_v35 = vld [vmem:[%s721_s15 + $0x32] sm:$0x1]  ;;  %v209_v40 = vld [vmem:[%s721_s15 + $0x34] sm:$0x1] }
  0x3d   : > { %v343_v36 = vsel %vm327_vm5, %v342_v9, %v341_v30  ;;  %v346_v37 = vrot.slane %v264_v22, 7  ;;  %v348_v38 = vrot.slane %v265_v27, 6  ;;  %v350_v39 = vrot.slane %v266_v28, 5  ;;  %v210_v44 = vld [vmem:[%s721_s15 + $0x36] sm:$0x1] }
  0x3e   : > { %v345_v41 = vsel %vm330_vm6, %v344_v10, %v343_v36  ;;  %v352_v42 = vrot.slane %v267_v29, 4  ;;  %v354_v43 = vrot.slane %v268_v31, 3  ;;  %v211_v45 = vld [vmem:[%s721_s15 + $0x38] sm:$0x1]  ;;  %v356_v47 = vrot.slane %v269_v32, 2 }
  0x3f   : > { %380 = vst.msk [vmem:[%s771_s20 + $0x8] sm:$0xff] %vm378_vm7, %v345_v41  ;;  %v347_v46 = vsel %vm312_vm0, %v346_v37, %v263_v21  ;;  %v358_v48 = vrot.slane %v270_v33, 1  ;;  %v212_v49 = vld [vmem:[%s721_s15 + $0x3a] sm:$0x1]  ;;  %v213_v50 = vld [vmem:[%s721_s15 + $0x3c] sm:$0x1] }
  0x40   : > { %v349_v51 = vsel %vm315_vm1, %v348_v38, %v347_v46  ;;  %v214_v52 = vld [vmem:[%s721_s15 + $0x3e] sm:$0x1]  ;;  %v239_v53 = vld [vmem:[%s721_s15 + $0x31] sm:$0x1]  ;;  %v240_v54 = vld [vmem:[%s721_s15 + $0x33] sm:$0x1] }
  0x41   : > { %v351_v55 = vsel %vm318_vm2, %v350_v39, %v349_v51  ;;  %v241_v56 = vld [vmem:[%s721_s15 + $0x35] sm:$0x1]  ;;  %v242_v57 = vld [vmem:[%s721_s15 + $0x37] sm:$0x1]  ;;  %v243_v58 = vld [vmem:[%s721_s15 + $0x39] sm:$0x1]  ;;  %v271_v59 = vmax.f32 %v207_v34, %v239_v53  ;;  %v272_v60 = vmax.f32 %v208_v35, %v240_v54 }
  0x42   : > { %v353_v61 = vsel %vm321_vm3, %v352_v42, %v351_v55  ;;  %v244_v62 = vld [vmem:[%s721_s15 + $0x3b] sm:$0x1]  ;;  %v245_v63 = vld [vmem:[%s721_s15 + $0x3d] sm:$0x1]  ;;  %v246_v0 = vld [vmem:[%s721_s15 + $0x3f] sm:$0x1]  ;;  %v273_v1 = vmax.f32 %v209_v40, %v241_v56  ;;  %v274_v2 = vmax.f32 %v210_v44, %v242_v57  ;;  %v275_v3 = vmax.f32 %v211_v45, %v243_v58 }
  0x43   : > { %v355_v4 = vsel %vm324_vm4, %v354_v43, %v353_v61  ;;  %v276_v5 = vmax.f32 %v212_v49, %v244_v62  ;;  %v277_v6 = vmax.f32 %v213_v50, %v245_v63  ;;  %v278_v7 = vmax.f32 %v214_v52, %v246_v0 }
  0x44   : > { %v357_v8 = vsel %vm327_vm5, %v356_v47, %v355_v4  ;;  %v360_v9 = vrot.slane %v272_v60, 7  ;;  %v362_v10 = vrot.slane %v273_v1, 6  ;;  %v364_v11 = vrot.slane %v274_v2, 5 }
  0x45   : > { %v359_v12 = vsel %vm330_vm6, %v358_v48, %v357_v8  ;;  %v366_v13 = vrot.slane %v275_v3, 4  ;;  %v368_v15 = vrot.slane %v276_v5, 3  ;;  %v370_v17 = vrot.slane %v277_v6, 2 }
  0x46   : > { %381 = vst.msk [vmem:[%s771_s20 + $0x10] sm:$0xff] %vm378_vm7, %v359_v12  ;;  %v361_v14 = vsel %vm312_vm0, %v360_v9, %v271_v59  ;;  %v372_v19 = vrot.slane %v278_v7, 1 }
  0x47   : > { %v363_v16 = vsel %vm315_vm1, %v362_v10, %v361_v14 }
  0x48   : > { %v365_v18 = vsel %vm318_vm2, %v364_v11, %v363_v16 }
  0x49   : > { %v367_v20 = vsel %vm321_vm3, %v366_v13, %v365_v18 }
  0x4a   : > { %v369_v21 = vsel %vm324_vm4, %v368_v15, %v367_v20 }
  0x4b   : > { %v371_v22 = vsel %vm327_vm5, %v370_v17, %v369_v21 }
  0x4c   : > { %v373_v23 = vsel %vm330_vm6, %v372_v19, %v371_v22 }
  0x4d   : > { %382 = vst.msk [vmem:[%s771_s20 + $0x18] sm:$0xff] %vm378_vm7, %v373_v23 }
  0x4e PF: > { %s14_s11 = sadd.s32 1, %s637_s11   ;;  %s861_s6 = smov %s621_s7 }
  0x4f   : > { %p11_p7 = scmp.ge.s32.totalorder %s14_s11, 4   ;;  %s862_s7 = smov %s625_s8 }
  0x50   : > { %s863_s8 = smov %s701_s18  ;;  %s864_s9 = smov %s633_s10 }
  0x51   : > { %s865_s10 = smov %s867_s13  ;;  %13 = sbr.rel (!%p11_p7) target bundleno = 4 (0x4), region = 64 }
  0x56   :  { %417 = vsyncpa [#allocation3], 1 }
  0x57   :  { %419 = vsyncpa [#allocation3 + $0x1], 1 }

</bundles_post_ra>
